<compile_context>
chip_gen: v6e
topology: v6e:2x2x1
jax: 0.10.0
libtpu: 0.0.40
codegen_flags: <defaults>
</compile_context>

<pallas_src>
import functools
import math

import jax
import jax.numpy as jnp
from jax.experimental import pallas as pl
from jax.experimental.pallas import tpu as pltpu


_PEEL_MAX_K = 16  # above this, switch from O(k) max-peel to 32-pass bisection


def _round_up(x, m):
    return ((x + m - 1) // m) * m


def _vmem_capacity_bytes():
    """Per-core VMEM capacity; conservative 64 MiB (v7x-sized) if query fails."""
    try:
        return int(pltpu.get_tpu_info().vmem_capacity_bytes)
    except Exception:
        return 64 << 20


# ---------------------------------------------------------------------------
# KWinners epilogue (operates on the f32 linear output of one batch tile)
# ---------------------------------------------------------------------------

def _kth_largest_peel(y, k):
    """k-th largest value per row by peeling maxima (small static k)."""
    neg_inf = jnp.float32(-jnp.inf)

    def body(_, carry):
        thresh, work = carry
        m = jnp.max(work, axis=-1, keepdims=True)
        work = jnp.where(work >= m, neg_inf, work)
        return m, work

    init = (jnp.full((y.shape[0], 1), neg_inf, jnp.float32), y)
    # Bounded unroll: LLO scheduler visibility without bundle blowup / long
    # live ranges of the (tb, N) f32 work tile.
    thresh, _ = jax.lax.fori_loop(0, k, body, init, unroll=min(k, 8))
    return thresh


def _topk_mask_bisect(y, k):
    """Exact per-row top-k winner mask via 32-step bisection on int32 keys.

    Cost is independent of k: 32 VPU-compare + XLU row-count passes instead of
    k serially dependent max-peel passes. Keys are an order-preserving
    reinterpretation of the f32 bits (NaNs not expected from a linear layer).
    """
    bits = pltpu.bitcast(y, jnp.int32)
    key = jnp.where(bits < 0, bits ^ jnp.int32(0x7FFFFFFF), bits)
    lo = jnp.min(key, axis=-1, keepdims=True)   # invariant: count(>= lo) >= k
    hi = jnp.max(key, axis=-1, keepdims=True)   # invariant: count(>= hi+1) < k

    def body(_, carry):
        lo, hi = carry
        # ceil((lo + hi) / 2) without int32 overflow.
        floor_mid = (lo >> 1) + (hi >> 1) + (lo & hi & 1)
        mid = floor_mid + ((lo ^ hi) & 1)
        cnt = jnp.sum((key >= mid).astype(jnp.int32), axis=-1, keepdims=True)
        ge = cnt >= k
        return jnp.where(ge, mid, lo), jnp.where(ge, hi, mid - 1)

    lo, _ = jax.lax.fori_loop(0, 32, body, (lo, hi))
    # lo == k-th largest key. Ties at the threshold are all kept (torch.topk
    # keeps exactly k by index) -- measure-zero for continuous activations.
    return key >= lo


def _kwinners(y, *, k, n_valid):
    """KWinners with boost_strength=0: keep per-row top-k, zero the rest."""
    rows, n_pad = y.shape
    if n_valid < n_pad:  # lane-padding columns must not compete or win
        col = jax.lax.broadcasted_iota(jnp.int32, (rows, n_pad), 1)
        valid = col < n_valid
        y_srch = jnp.where(valid, y, jnp.float32(-jnp.inf))
    else:
        valid = None
        y_srch = y

    if k <= 0:  # kw_percent_on == 0 -> ReLU (per the module docstring)
        act = jnp.maximum(y, jnp.float32(0.0))
        return jnp.where(valid, act, jnp.float32(0.0)) if valid is not None else act
    if k >= n_valid:  # degenerate: keep every valid unit
        return jnp.where(valid, y, jnp.float32(0.0)) if valid is not None else y

    if k <= _PEEL_MAX_K:
        win = y_srch >= _kth_largest_peel(y_srch, k)
    else:
        win = _topk_mask_bisect(y_srch, k)
    return jnp.where(win, y, jnp.float32(0.0))


# ---------------------------------------------------------------------------
# Kernels
# ---------------------------------------------------------------------------

def _sp_kernel_resident(x_ref, w_ref, b_ref, o_ref, *, k, n_valid):
    """Resident-weights path: one MXU matmul per batch tile + KWinners."""
    y = jnp.dot(x_ref[...].astype(w_ref.dtype), w_ref[...],
                preferred_element_type=jnp.float32) + b_ref[...]
    o_ref[...] = _kwinners(y, k=k, n_valid=n_valid).astype(o_ref.dtype)


def _sp_kernel_dsplit(x_ref, w_ref, b_ref, o_ref, acc_ref, *, k, n_valid):
    """D-split path: weights streamed along a reduction grid axis (P3)."""
    kk = pl.program_id(1)
    part = jnp.dot(x_ref[...].astype(w_ref.dtype), w_ref[...],
                   preferred_element_type=jnp.float32)

    @pl.when(kk == 0)
    def _init():
        acc_ref[...] = part

    @pl.when(kk != 0)
    def _accum():
        acc_ref[...] += part

    @pl.when(kk == pl.num_programs(1) - 1)
    def _finalize():
        y = acc_ref[...] + b_ref[...]
        o_ref[...] = _kwinners(y, k=k, n_valid=n_valid).astype(o_ref.dtype)


# ---------------------------------------------------------------------------
# Host-side wrapper
# ---------------------------------------------------------------------------

def sp_forward(x, w_masked_t, b, *, percent_on, batch_tile=512,
               out_dtype=jnp.float32, max_resident_weight_bytes=None):
    """SP forward: (x @ W_masked.T + b) -> KWinners(top-k per row).

    x: (B, D) f32; w_masked_t: (D, N) masked, pre-transposed weights
    (bf16/f32/fp8); b: (N,) f32.
    """
    B, D = x.shape
    D2, N = w_masked_t.shape
    assert D == D2 and b.shape == (N,)

    if percent_on <= 0.0:
        k = 0  # ReLU path
    else:
        k = max(1, min(int(round(percent_on * N)), N))

    w_item = jnp.dtype(w_masked_t.dtype).itemsize
    x_item = jnp.dtype(x.dtype).itemsize
    out_item = jnp.dtype(out_dtype).itemsize

    # Lane-dense / MXU-friendly padding (padded output columns are masked to
    # -inf before the top-k and zeroed in the store).
    Dp = _round_up(D, 128)
    Np = _round_up(N, 128)

    # ---- batch tile: big tiles amortize per-grid-step overhead; keep >= 2
    # grid steps when possible so "parallel" can shard across v7x's 2 cores.
    tb = _round_up(min(int(batch_tile), _round_up(B, 8)), 8)
    if B >= 16 and -(-B // tb) < 2:
        tb = _round_up(-(-B // 2), 8)

    # ---- generation-aware VMEM budget (v7x ~56 MiB, v5e/v6e ~112 MiB) ----
    cap = _vmem_capacity_bytes()
    usable = cap - max(cap // 8, 8 << 20)

    def nonweight_bytes(tb_, d_block):
        return (2 * tb_ * d_block * x_item      # double-buffered x tiles
                + 2 * tb_ * Np * out_item       # double-buffered out tiles
                + Np * 4)                       # bias (single buffer)

    # Shrink tb if even a minimal-depth weight block + working set won't fit.
    while tb > 8 and (nonweight_bytes(tb, min(Dp, 128))
                      + 2 * 128 * Np * w_item + tb * Np * 4) > usable:
        tb = max(8, _round_up(tb // 2, 8))
    Bp = _round_up(B, tb)

    # ---- resident weights vs D-split (reduction grid) decision ----
    resident_w_bytes = Dp * Np * w_item                 # single-buffered
    weight_budget = usable - nonweight_bytes(tb, Dp)
    if max_resident_weight_bytes is not None:
        weight_budget = min(weight_budget, int(max_resident_weight_bytes))
    use_dsplit = resident_w_bytes > weight_budget

    if use_dsplit:
        budget = max(weight_budget, 2 * 128 * Np * w_item)
        tk_d = min(Dp, max(128, (budget // (2 * Np * w_item)) // 128 * 128))
        Dp = _round_up(Dp, tk_d)
        nk = Dp // tk_d
    else:
        tk_d = Dp
        nk = 1

    # ---- pad operands (zero padding along D/N does not change results) ----
    xp = x if (Bp == B and Dp == D) else jnp.pad(x, ((0, Bp - B), (0, Dp - D)))
    wp = (w_masked_t if (Dp == D and Np == N)
          else jnp.pad(w_masked_t, ((0, Dp - D), (0, Np - N))))
    bp = jnp.pad(b.astype(jnp.float32), (0, Np - N)).reshape(1, Np)

    def run(single_buffer_resident):
        resident_kw = (dict(pipeline_mode=pl.Buffered(1))
                       if single_buffer_resident else {})
        if nk == 1:
            w_bufs = 1 if single_buffer_resident else 2
            need = w_bufs * resident_w_bytes + nonweight_bytes(tb, Dp)
            vmem_limit = int(min(max(need + (4 << 20), 16 << 20), usable))
            kernel = functools.partial(_sp_kernel_resident, k=k, n_valid=N)
            return pl.pallas_call(
                kernel,
                out_shape=jax.ShapeDtypeStruct((Bp, Np), out_dtype),
                grid=(Bp // tb,),
                in_specs=[
                    pl.BlockSpec((tb, Dp), lambda i: (i, 0)),            # pipelined
                    pl.BlockSpec((Dp, Np), lambda i: (0, 0), **resident_kw),
                    pl.BlockSpec((1, Np), lambda i: (0, 0), **resident_kw),
                ],
                out_specs=pl.BlockSpec((tb, Np), lambda i: (i, 0)),
                compiler_params=pltpu.CompilerParams(
                    dimension_semantics=("parallel",),
                    vmem_limit_bytes=vmem_limit),
            )(xp, wp, bp)
        else:
            need = (2 * tk_d * Np * w_item + nonweight_bytes(tb, tk_d)
                    + tb * Np * 4)                       # f32 accumulator
            vmem_limit = int(min(max(need + (4 << 20), 16 << 20), usable))
            kernel = functools.partial(_sp_kernel_dsplit, k=k, n_valid=N)
            return pl.pallas_call(
                kernel,
                out_shape=jax.ShapeDtypeStruct((Bp, Np), out_dtype),
                grid=(Bp // tb, nk),
                in_specs=[
                    pl.BlockSpec((tb, tk_d), lambda i, kk: (i, kk)),
                    pl.BlockSpec((tk_d, Np), lambda i, kk: (kk, 0)),
                    pl.BlockSpec((1, Np), lambda i, kk: (0, 0), **resident_kw),
                ],
                out_specs=pl.BlockSpec((tb, Np), lambda i, kk: (i, 0)),
                scratch_shapes=[pltpu.VMEM((tb, Np), jnp.float32)],
                compiler_params=pltpu.CompilerParams(
                    dimension_semantics=("parallel", "arbitrary"),
                    vmem_limit_bytes=vmem_limit),
            )(xp, wp, bp)

    try:
        out = run(True)
    except Exception:
        # pipeline_mode=pl.Buffered(1) unavailable on this JAX build: fall back
        # to default double-buffering (accounted for in the VMEM limit).
        out = run(False)

    return out[:B, :N]


# ---------------------------------------------------------------------------
# Parameter construction + pure-JAX reference
# ---------------------------------------------------------------------------

def make_sp_params(key, input_size, output_size, weight_sparsity,
                   weight_dtype=jnp.bfloat16):
    """Parameters mirroring SparseWeights(nn.Linear(input_size, output_size)).

    Weights are masked (round(sparsity * input_size) zeros per output unit),
    transposed to (D, N) and stored in `weight_dtype`. bf16 halves HBM weight
    traffic; on v7x, jnp.float8_e4m3fn is a further 2x (MXU-native fp8)."""
    kw, kb, km = jax.random.split(key, 3)
    bound = 1.0 / math.sqrt(float(input_size))
    w = jax.random.uniform(kw, (output_size, input_size), jnp.float32, -bound, bound)
    b = jax.random.uniform(kb, (output_size,), jnp.float32, -bound, bound)

    num_zeros = int(round(weight_sparsity * input_size))
    scores = jax.random.uniform(km, (output_size, input_size))
    order = jnp.argsort(scores, axis=-1)            # random permutation per row
    rank = jnp.argsort(order, axis=-1)
    mask = (rank >= num_zeros).astype(jnp.float32)  # keep input_size - num_zeros
    w_masked = (w * mask).astype(weight_dtype)
    return jnp.transpose(w_masked), b               # (D, N), (N,)


def sp_reference(x, w_masked_t, b, percent_on):
    """Pure-JAX reference for the SP forward pass (same dtypes as the kernel)."""
    y = jnp.dot(x.astype(w_masked_t.dtype), w_masked_t,
                preferred_element_type=jnp.float32) + b.astype(jnp.float32)
    n = y.shape[-1]
    if percent_on <= 0.0:
        return jnp.maximum(y, 0.0)
    k = max(1, min(int(round(percent_on * n)), n))
    kth = jax.lax.top_k(y, k)[0][..., -1:]
    return jnp.where(y >= kth, y, 0.0)


if __name__ == "__main__":
    root = jax.random.PRNGKey(0)

    def run_case(case_id, B, D, N, percent_on, **fwd_kwargs):
        kx, kp = jax.random.split(jax.random.fold_in(root, case_id))
        x = jax.random.normal(kx, (B, D), jnp.float32)
        w_t, bias = make_sp_params(kp, D, N, weight_sparsity=0.95)
        out = jax.block_until_ready(
            sp_forward(x, w_t, bias, percent_on=percent_on, **fwd_kwargs))
        ref = sp_reference(x, w_t, bias, percent_on)
        k = max(1, min(int(round(percent_on * N)), N))
        assert out.shape == (B, N), (case_id, out.shape)
        nnz = jnp.sum(out != 0.0, axis=-1)
        assert bool(jnp.all(nnz == k)), (case_id, k, nnz)
        assert bool(jnp.allclose(out, ref, rtol=1e-4, atol=1e-4)), case_id

    # 1) resident weights, small-k max-peel top-k.
    run_case(1, B=8, D=64, N=128, percent_on=0.05)
    # 2) bisection top-k + non-multiple-of-128 N (lane padding + masking).
    run_case(2, B=16, D=128, N=200, percent_on=0.10)
    # 3) D-split reduction-grid fallback, forced via a tiny resident budget.
    run_case(3, B=8, D=512, N=128, percent_on=0.05,
             max_resident_weight_bytes=96 * 1024)

    print("KERNEL_OK")
</pallas_src>

<mosaic_0001>
module attributes {stable_mosaic.version = 11 : i64} {
  func.func @_sp_kernel_resident(%arg0: i32, %arg1: memref<8x128xf32, #tpu.memory_space<vmem>>, %arg2: memref<128x128xbf16, #tpu.memory_space<vmem>>, %arg3: memref<1x128xf32, #tpu.memory_space<vmem>>, %arg4: memref<8x128xf32, #tpu.memory_space<vmem>>) attributes {dimension_semantics = [#tpu.dimension_semantics<parallel>], iteration_bounds = array<i64: 1>, scalar_prefetch = 0 : i64, scratch_operands = 0 : i64, tpu.core_type = #tpu.core_type<tc>, window_params = [{transform_indices = @transform_0, window_bounds = array<i64: 8, 128>}, {pipeline_mode = #tpu.pipeline_mode<synchronous>, transform_indices = @transform_1, window_bounds = array<i64: 128, 128>}, {pipeline_mode = #tpu.pipeline_mode<synchronous>, transform_indices = @transform_2, window_bounds = array<i64: 1, 128>}, {transform_indices = @transform_3, window_bounds = array<i64: 8, 128>}]} {
    %c0 = arith.constant 0 : index
    %c0_0 = arith.constant 0 : index
    %0 = vector.load %arg1[%c0, %c0_0] : memref<8x128xf32, #tpu.memory_space<vmem>>, vector<8x128xf32>
    %1 = arith.truncf %0 : vector<8x128xf32> to vector<8x128xbf16>
    %c0_1 = arith.constant 0 : index
    %c0_2 = arith.constant 0 : index
    %2 = vector.load %arg2[%c0_1, %c0_2] : memref<128x128xbf16, #tpu.memory_space<vmem>>, vector<128x128xbf16>
    %cst = arith.constant dense<0.000000e+00> : vector<8x128xf32>
    %3 = tpu.matmul %1, %2, %cst {dimension_numbers = #tpu.dot_dimension_numbers<[1], [0], [0], [1], [0, 0, 1, 1], [], []>} : vector<8x128xbf16>, vector<128x128xbf16>, vector<8x128xf32> -> vector<8x128xf32>
    %c0_3 = arith.constant 0 : index
    %c0_4 = arith.constant 0 : index
    %4 = vector.load %arg3[%c0_3, %c0_4] : memref<1x128xf32, #tpu.memory_space<vmem>>, vector<1x128xf32>
    %5 = vector.broadcast %4 : vector<1x128xf32> to vector<8x128xf32>
    %6 = arith.addf %3, %5 : vector<8x128xf32>
    %cst_5 = arith.constant 0xFF800000 : f32
    %7 = vector.broadcast %cst_5 : f32 to vector<8x1xf32>
    %cst_6 = arith.constant 0xFF800000 : f32
    %c0_i32 = arith.constant 0 : i32
    %cst_7 = arith.constant dense<0xFF800000> : vector<8xf32>
    %8 = vector.multi_reduction <maximumf>, %6, %cst_7 [1] : vector<8x128xf32> to vector<8xf32>
    %9 = vector.shape_cast %8 : vector<8xf32> to vector<8x1xf32>
    %10 = vector.broadcast %9 : vector<8x1xf32> to vector<8x128xf32>
    %11 = arith.cmpf oge, %6, %10 : vector<8x128xf32>
    %12 = vector.broadcast %cst_6 : f32 to vector<8x128xf32>
    %13 = arith.select %11, %12, %6 : vector<8x128xi1>, vector<8x128xf32>
    %c1_i32 = arith.constant 1 : i32
    %cst_8 = arith.constant dense<0xFF800000> : vector<8xf32>
    %14 = vector.multi_reduction <maximumf>, %13, %cst_8 [1] : vector<8x128xf32> to vector<8xf32>
    %15 = vector.shape_cast %14 : vector<8xf32> to vector<8x1xf32>
    %16 = vector.broadcast %15 : vector<8x1xf32> to vector<8x128xf32>
    %17 = arith.cmpf oge, %13, %16 : vector<8x128xf32>
    %18 = vector.broadcast %cst_6 : f32 to vector<8x128xf32>
    %19 = arith.select %17, %18, %13 : vector<8x128xi1>, vector<8x128xf32>
    %c2_i32 = arith.constant 2 : i32
    %cst_9 = arith.constant dense<0xFF800000> : vector<8xf32>
    %20 = vector.multi_reduction <maximumf>, %19, %cst_9 [1] : vector<8x128xf32> to vector<8xf32>
    %21 = vector.shape_cast %20 : vector<8xf32> to vector<8x1xf32>
    %22 = vector.broadcast %21 : vector<8x1xf32> to vector<8x128xf32>
    %23 = arith.cmpf oge, %19, %22 : vector<8x128xf32>
    %24 = vector.broadcast %cst_6 : f32 to vector<8x128xf32>
    %25 = arith.select %23, %24, %19 : vector<8x128xi1>, vector<8x128xf32>
    %c3_i32 = arith.constant 3 : i32
    %cst_10 = arith.constant dense<0xFF800000> : vector<8xf32>
    %26 = vector.multi_reduction <maximumf>, %25, %cst_10 [1] : vector<8x128xf32> to vector<8xf32>
    %27 = vector.shape_cast %26 : vector<8xf32> to vector<8x1xf32>
    %28 = vector.broadcast %27 : vector<8x1xf32> to vector<8x128xf32>
    %29 = arith.cmpf oge, %25, %28 : vector<8x128xf32>
    %30 = vector.broadcast %cst_6 : f32 to vector<8x128xf32>
    %31 = arith.select %29, %30, %25 : vector<8x128xi1>, vector<8x128xf32>
    %c4_i32 = arith.constant 4 : i32
    %cst_11 = arith.constant dense<0xFF800000> : vector<8xf32>
    %32 = vector.multi_reduction <maximumf>, %31, %cst_11 [1] : vector<8x128xf32> to vector<8xf32>
    %33 = vector.shape_cast %32 : vector<8xf32> to vector<8x1xf32>
    %34 = vector.broadcast %33 : vector<8x1xf32> to vector<8x128xf32>
    %35 = arith.cmpf oge, %31, %34 : vector<8x128xf32>
    %36 = vector.broadcast %cst_6 : f32 to vector<8x128xf32>
    %37 = arith.select %35, %36, %31 : vector<8x128xi1>, vector<8x128xf32>
    %c5_i32 = arith.constant 5 : i32
    %cst_12 = arith.constant dense<0xFF800000> : vector<8xf32>
    %38 = vector.multi_reduction <maximumf>, %37, %cst_12 [1] : vector<8x128xf32> to vector<8xf32>
    %39 = vector.shape_cast %38 : vector<8xf32> to vector<8x1xf32>
    %40 = vector.broadcast %39 : vector<8x1xf32> to vector<8x128xf32>
    %41 = arith.cmpf oge, %37, %40 : vector<8x128xf32>
    %42 = vector.broadcast %cst_6 : f32 to vector<8x128xf32>
    %43 = arith.select %41, %42, %37 : vector<8x128xi1>, vector<8x128xf32>
    %44 = vector.broadcast %39 : vector<8x1xf32> to vector<8x128xf32>
    %45 = arith.cmpf oge, %6, %44 : vector<8x128xf32>
    %cst_13 = arith.constant 0.000000e+00 : f32
    %46 = vector.broadcast %cst_13 : f32 to vector<8x128xf32>
    %47 = arith.select %45, %6, %46 : vector<8x128xi1>, vector<8x128xf32>
    %c0_14 = arith.constant 0 : index
    %c0_15 = arith.constant 0 : index
    %48 = vector.load %arg4[%c0_14, %c0_15] : memref<8x128xf32, #tpu.memory_space<vmem>>, vector<8x128xf32>
    tpu.vector_store %arg4[%c0_14, %c0_15], %47 {strides = array<i32>} : memref<8x128xf32, #tpu.memory_space<vmem>>, vector<8x128xf32>,
    return
  }
  func.func @transform_0(%arg0: i32) -> (i32, i32) {
    %c0_i32 = arith.constant 0 : i32
    %c0_i32_0 = arith.constant 0 : i32
    return %arg0, %c0_i32 : i32, i32
  }
  func.func @transform_1(%arg0: i32) -> (i32, i32) {
    %c0_i32 = arith.constant 0 : i32
    %c0_i32_0 = arith.constant 0 : i32
    %c0_i32_1 = arith.constant 0 : i32
    return %c0_i32, %c0_i32_0 : i32, i32
  }
  func.func @transform_2(%arg0: i32) -> (i32, i32) {
    %c0_i32 = arith.constant 0 : i32
    %c0_i32_0 = arith.constant 0 : i32
    %c0_i32_1 = arith.constant 0 : i32
    return %c0_i32, %c0_i32_0 : i32, i32
  }
  func.func @transform_3(%arg0: i32) -> (i32, i32) {
    %c0_i32 = arith.constant 0 : i32
    %c0_i32_0 = arith.constant 0 : i32
    return %arg0, %c0_i32 : i32, i32
  }
}

module attributes {stable_mosaic.version = 11 : i64} {
  func.func @_sp_kernel_resident(%arg0: i32, %arg1: memref<8x128xf32, #tpu.memory_space<vmem>>, %arg2: memref<128x128xbf16, #tpu.memory_space<vmem>>, %arg3: memref<1x128xf32, #tpu.memory_space<vmem>>, %arg4: memref<8x128xf32, #tpu.memory_space<vmem>>) attributes {dimension_semantics = [#tpu.dimension_semantics<parallel>], iteration_bounds = array<i64: 1>, scalar_prefetch = 0 : i64, scratch_operands = 0 : i64, tpu.core_type = #tpu.core_type<tc>, window_params = [{transform_indices = @transform_0, window_bounds = array<i64: 8, 128>}, {pipeline_mode = #tpu.pipeline_mode<synchronous>, transform_indices = @transform_1, window_bounds = array<i64: 128, 128>}, {pipeline_mode = #tpu.pipeline_mode<synchronous>, transform_indices = @transform_2, window_bounds = array<i64: 1, 128>}, {transform_indices = @transform_3, window_bounds = array<i64: 8, 128>}]} {
    %c0 = arith.constant 0 : index
    %c0_0 = arith.constant 0 : index
    %0 = vector.load %arg1[%c0, %c0_0] : memref<8x128xf32, #tpu.memory_space<vmem>>, vector<8x128xf32>
    %1 = arith.truncf %0 : vector<8x128xf32> to vector<8x128xbf16>
    %c0_1 = arith.constant 0 : index
    %c0_2 = arith.constant 0 : index
    %2 = vector.load %arg2[%c0_1, %c0_2] : memref<128x128xbf16, #tpu.memory_space<vmem>>, vector<128x128xbf16>
    %cst = arith.constant dense<0.000000e+00> : vector<8x128xf32>
    %3 = tpu.matmul %1, %2, %cst {dimension_numbers = #tpu.dot_dimension_numbers<[1], [0], [0], [1], [0, 0, 1, 1], [], []>} : vector<8x128xbf16>, vector<128x128xbf16>, vector<8x128xf32> -> vector<8x128xf32>
    %c0_3 = arith.constant 0 : index
    %c0_4 = arith.constant 0 : index
    %4 = vector.load %arg3[%c0_3, %c0_4] : memref<1x128xf32, #tpu.memory_space<vmem>>, vector<1x128xf32>
    %5 = vector.broadcast %4 : vector<1x128xf32> to vector<8x128xf32>
    %6 = arith.addf %3, %5 : vector<8x128xf32>
    %cst_5 = arith.constant 0xFF800000 : f32
    %7 = vector.broadcast %cst_5 : f32 to vector<8x1xf32>
    %cst_6 = arith.constant 0xFF800000 : f32
    %c0_i32 = arith.constant 0 : i32
    %cst_7 = arith.constant dense<0xFF800000> : vector<8xf32>
    %8 = vector.multi_reduction <maximumf>, %6, %cst_7 [1] : vector<8x128xf32> to vector<8xf32>
    %9 = vector.shape_cast %8 : vector<8xf32> to vector<8x1xf32>
    %10 = vector.broadcast %9 : vector<8x1xf32> to vector<8x128xf32>
    %11 = arith.cmpf oge, %6, %10 : vector<8x128xf32>
    %12 = vector.broadcast %cst_6 : f32 to vector<8x128xf32>
    %13 = arith.select %11, %12, %6 : vector<8x128xi1>, vector<8x128xf32>
    %c1_i32 = arith.constant 1 : i32
    %cst_8 = arith.constant dense<0xFF800000> : vector<8xf32>
    %14 = vector.multi_reduction <maximumf>, %13, %cst_8 [1] : vector<8x128xf32> to vector<8xf32>
    %15 = vector.shape_cast %14 : vector<8xf32> to vector<8x1xf32>
    %16 = vector.broadcast %15 : vector<8x1xf32> to vector<8x128xf32>
    %17 = arith.cmpf oge, %13, %16 : vector<8x128xf32>
    %18 = vector.broadcast %cst_6 : f32 to vector<8x128xf32>
    %19 = arith.select %17, %18, %13 : vector<8x128xi1>, vector<8x128xf32>
    %c2_i32 = arith.constant 2 : i32
    %cst_9 = arith.constant dense<0xFF800000> : vector<8xf32>
    %20 = vector.multi_reduction <maximumf>, %19, %cst_9 [1] : vector<8x128xf32> to vector<8xf32>
    %21 = vector.shape_cast %20 : vector<8xf32> to vector<8x1xf32>
    %22 = vector.broadcast %21 : vector<8x1xf32> to vector<8x128xf32>
    %23 = arith.cmpf oge, %19, %22 : vector<8x128xf32>
    %24 = vector.broadcast %cst_6 : f32 to vector<8x128xf32>
    %25 = arith.select %23, %24, %19 : vector<8x128xi1>, vector<8x128xf32>
    %c3_i32 = arith.constant 3 : i32
    %cst_10 = arith.constant dense<0xFF800000> : vector<8xf32>
    %26 = vector.multi_reduction <maximumf>, %25, %cst_10 [1] : vector<8x128xf32> to vector<8xf32>
    %27 = vector.shape_cast %26 : vector<8xf32> to vector<8x1xf32>
    %28 = vector.broadcast %27 : vector<8x1xf32> to vector<8x128xf32>
    %29 = arith.cmpf oge, %25, %28 : vector<8x128xf32>
    %30 = vector.broadcast %cst_6 : f32 to vector<8x128xf32>
    %31 = arith.select %29, %30, %25 : vector<8x128xi1>, vector<8x128xf32>
    %c4_i32 = arith.constant 4 : i32
    %cst_11 = arith.constant dense<0xFF800000> : vector<8xf32>
    %32 = vector.multi_reduction <maximumf>, %31, %cst_11 [1] : vector<8x128xf32> to vector<8xf32>
    %33 = vector.shape_cast %32 : vector<8xf32> to vector<8x1xf32>
    %34 = vector.broadcast %33 : vector<8x1xf32> to vector<8x128xf32>
    %35 = arith.cmpf oge, %31, %34 : vector<8x128xf32>
    %36 = vector.broadcast %cst_6 : f32 to vector<8x128xf32>
    %37 = arith.select %35, %36, %31 : vector<8x128xi1>, vector<8x128xf32>
    %c5_i32 = arith.constant 5 : i32
    %cst_12 = arith.constant dense<0xFF800000> : vector<8xf32>
    %38 = vector.multi_reduction <maximumf>, %37, %cst_12 [1] : vector<8x128xf32> to vector<8xf32>
    %39 = vector.shape_cast %38 : vector<8xf32> to vector<8x1xf32>
    %40 = vector.broadcast %39 : vector<8x1xf32> to vector<8x128xf32>
    %41 = arith.cmpf oge, %37, %40 : vector<8x128xf32>
    %42 = vector.broadcast %cst_6 : f32 to vector<8x128xf32>
    %43 = arith.select %41, %42, %37 : vector<8x128xi1>, vector<8x128xf32>
    %44 = vector.broadcast %39 : vector<8x1xf32> to vector<8x128xf32>
    %45 = arith.cmpf oge, %6, %44 : vector<8x128xf32>
    %cst_13 = arith.constant 0.000000e+00 : f32
    %46 = vector.broadcast %cst_13 : f32 to vector<8x128xf32>
    %47 = arith.select %45, %6, %46 : vector<8x128xi1>, vector<8x128xf32>
    %c0_14 = arith.constant 0 : index
    %c0_15 = arith.constant 0 : index
    %48 = vector.load %arg4[%c0_14, %c0_15] : memref<8x128xf32, #tpu.memory_space<vmem>>, vector<8x128xf32>
    tpu.vector_store %arg4[%c0_14, %c0_15], %47 {strides = array<i32>} : memref<8x128xf32, #tpu.memory_space<vmem>>, vector<8x128xf32>,
    return
  }
  func.func @transform_0(%arg0: i32) -> (i32, i32) {
    %c0_i32 = arith.constant 0 : i32
    %c0_i32_0 = arith.constant 0 : i32
    return %arg0, %c0_i32 : i32, i32
  }
  func.func @transform_1(%arg0: i32) -> (i32, i32) {
    %c0_i32 = arith.constant 0 : i32
    %c0_i32_0 = arith.constant 0 : i32
    %c0_i32_1 = arith.constant 0 : i32
    return %c0_i32, %c0_i32_0 : i32, i32
  }
  func.func @transform_2(%arg0: i32) -> (i32, i32) {
    %c0_i32 = arith.constant 0 : i32
    %c0_i32_0 = arith.constant 0 : i32
    %c0_i32_1 = arith.constant 0 : i32
    return %c0_i32, %c0_i32_0 : i32, i32
  }
  func.func @transform_3(%arg0: i32) -> (i32, i32) {
    %c0_i32 = arith.constant 0 : i32
    %c0_i32_0 = arith.constant 0 : i32
    return %arg0, %c0_i32 : i32, i32
  }
}

</mosaic_0001>

<bundles_post_ra>
// kernel: tpu_custom_call.1
= control target key start
LH: loop header
LB: loop body
LE: loop exit
PB: predicated region body
PF: predicated region fallthrough
CT: control target
= control target key end

     0   :  { %8 = vsyncpa [#allocation3], 0  ;;  %s354_s0 = inlined_call_operand.hbm [shape: f32[8,128], index: 0, kind: input, shape index: {}]   ;;  %s355_s1 = inlined_call_operand.hbm [shape: bf16[128,128], index: 1, kind: input, shape index: {}]   ;;  %s356_s2 = inlined_call_operand.vmem [shape: f32[1,128], index: 2, kind: input, shape index: {}]   ;;  %s357_s3 = inlined_call_operand.hbm [shape: f32[8,128], index: 3, kind: output, shape index: {}]  }
   0x1   :  { %9 = vsyncpa [#allocation6], 0 }
   0x2   :  { %10 = vsyncpa [#allocation4], 0  ;;  %s315_s12 = smov [#allocation2]   ;;  %s316_s14 = smov [#allocation5]  }
   0x3   :  { %s17_s13 = sshll.u32 %s315_s12, 4  ;;  %s26_s15 = sshll.u32 %s316_s14, 4  ;;  %s18_s13 = int_to_ptr.vmem [resolvable:$true] %s17_s13  ;;  %s27_s15 = int_to_ptr.vmem [resolvable:$true] %s26_s15 }
   0x4   :  { %s257_s16 = scalar_lea.vmem %s18_s13, 128  ;;  %p262_p1 = scmp.lt.s32.totalorder %s18_s13, %s18_s13 }
   0x5   :  { %p258_p0 = scmp.ne.s32.totalorder %s18_s13, %s257_s16  ;;  %p263_p2 = scmp.lt.s32.totalorder %s257_s16, %s257_s16 }
   0x7   :  { %p264_p3 = por %p263_p2, %p262_p1 }
   0x9   :  { %p265_p4 = pnand %p264_p3, %p258_p0 }
   0xb   :  { %268 = shalt.err (!%p265_p4)
}
   0xc   :  { %20 = dma.hbm_to_vmem [thread:$0]  %s354_s0, 128, %s18_s13, [#allocation3]  }
   0xd   :  { %s277_s19 = scalar_lea.vmem %s27_s15, 1024  ;;  %p282_p6 = scmp.lt.s32.totalorder %s27_s15, %s27_s15 }
   0xe   :  { %p278_p5 = scmp.ne.s32.totalorder %s27_s15, %s277_s19  ;;  %p283_p7 = scmp.lt.s32.totalorder %s277_s19, %s277_s19 }
  0x10   :  { %p284_p8 = por %p283_p7, %p282_p6 }
  0x12   :  { %p285_p9 = pnand %p284_p8, %p278_p5 }
  0x14   :  { %288 = shalt.err (!%p285_p9)
}
  0x15   :  { %s317_s20 = smov 64   ;;  %s318_s21 = smov 4  }
  0x16   :  { %32 = dma.hbm_to_vmem [thread:$0]  %s355_s1, 1024, %s27_s15, [#allocation6], %s317_s20, %s317_s20, %s318_s21  }
  0x17   :  { %309 = dma.done.wait [#allocation3], 128  }
  0x18   :  { %310 = vsyncadd [#allocation3], 4294967168 }
  0x19   :  { %311 = dma.done.wait [#allocation6], 1024  }
  0x1a   :  { %312 = vsyncadd [#allocation6], 4294966272  ;;  %v319_v0 = vmov 0.0   ;;  %vm320_vm0 = vmmov 0   ;;  %v241_v1 = vld [vmem:[#allocation5 + $0x38] sm:$0xff]   ;;  %v242_v2 = vld [vmem:[#allocation5 + $0x30] sm:$0xff]  }
  0x1b   :  { %214 = vmatprep.subr.bf16.mxu0 %v319_v0  ;;  %230 = vmatprep.mubr.msk.bf16.mxu0 %vm320_vm0, %v319_v0  ;;  %v243_v3 = vld [vmem:[#allocation5 + $0x28] sm:$0xff]   ;;  %v244_v4 = vld [vmem:[#allocation5 + $0x20] sm:$0xff]   ;;  %v245_v5 = vld [vmem:[#allocation5 + $0x18] sm:$0xff]  }
  0x1c   :  { %215 = vmatpush3.bf16.msra.mxu0 %v241_v1  ;;  %v246_v6 = vld [vmem:[#allocation5 + $0x10] sm:$0xff]   ;;  %v247_v7 = vld [vmem:[#allocation5 + $0x8] sm:$0xff]   ;;  %v248_v8 = vld [vmem:[#allocation5] sm:$0xff]  }
  0x1d   :  { %216 = vmatprep.subr.bf16.mxu0 %v319_v0  ;;  %v42_v9 = vld [vmem:[#allocation2] sm:$0xff] }
  0x1e   :  { %v43_v10 = vpack.c.bf16 %v42_v9, %v42_v9  ;;  %v196_v11 = vld [vmem:[%s356_s2] ss:$0 sm:$0xff]  ;;  %s321_s2 = smov [#allocation7]  }
  0x1f   :  { %s186_s24 = sshll.u32 %s321_s2, 4  ;;  %s187_s24 = int_to_ptr.vmem [resolvable:$true] %s186_s24 }
  0x20   :  { %217 = vmatpush3.bf16.msra.mxu0 %v242_v2  ;;  %s289_s25 = scalar_lea.vmem %s187_s24, 128  ;;  %p294_p11 = scmp.lt.s32.totalorder %s187_s24, %s187_s24 }
  0x21   :  { %218 = vmatprep.subr.bf16.mxu0 %v319_v0  ;;  %p290_p10 = scmp.ne.s32.totalorder %s187_s24, %s289_s25  ;;  %p295_p12 = scmp.lt.s32.totalorder %s289_s25, %s289_s25 }
  0x23   :  { %p296_p13 = por %p295_p12, %p294_p11 }
  0x24   :  { %219 = vmatpush3.bf16.msra.mxu0 %v243_v3 }
  0x25   :  { %220 = vmatprep.subr.bf16.mxu0 %v319_v0  ;;  %p297_p0 = pnand %p296_p13, %p290_p10 }
  0x28   :  { %221 = vmatpush3.bf16.msra.mxu0 %v244_v4 }
  0x29   :  { %222 = vmatprep.subr.bf16.mxu0 %v319_v0 }
  0x2c   :  { %223 = vmatpush3.bf16.msra.mxu0 %v245_v5 }
  0x2d   :  { %224 = vmatprep.subr.bf16.mxu0 %v319_v0 }
  0x30   :  { %225 = vmatpush3.bf16.msra.mxu0 %v246_v6 }
  0x31   :  { %226 = vmatprep.subr.bf16.mxu0 %v319_v0 }
  0x34   :  { %227 = vmatpush3.bf16.msra.mxu0 %v247_v7 }
  0x35   :  { %228 = vmatprep.subr.bf16.mxu0 %v319_v0 }
  0x38   :  { %229 = vmatpush3.bf16.msra.mxu0 %v248_v8 }
  0x3b   :  { %231 = vmatmul.mubr.bf16.vlgmr.msra.gmra.mxu0 %v43_v10 }
  0xfb   :  { %v149_v12 = vpop.f32.mrf.mxu0 }
  0xfc   :  { %v150_v13 = vadd.f32 %v196_v11, %v149_v12 }
  0xfd   :  { %v232_v14 = vpop.f32.mrf.mxu0 }
  0xfe   :  { %155 = vmax.xlane.f32.xlu0 %v150_v13 }
  0xff   :  { %v152_v15 = vpop.f32.mrf.mxu0 }
 0x101   :  { %v233_v16 = vpop.f32.mrf.mxu0 }
 0x187   :  { %v156_v17 = vpop.xlane.xlu0 %155 }
 0x188   :  { %vm157_vm1 = vcmp.ge.f32.partialorder %v150_v13, %v156_v17 }
 0x189   :  { %v158_v18 = vsel %vm157_vm1, -inf, %v150_v13 }
 0x18a   :  { %159 = vmax.xlane.f32.xlu0 %v158_v18 }
 0x213   :  { %v160_v19 = vpop.xlane.xlu0 %159 }
 0x214   :  { %vm161_vm2 = vcmp.ge.f32.partialorder %v158_v18, %v160_v19 }
 0x215   :  { %v162_v20 = vsel %vm161_vm2, -inf, %v158_v18 }
 0x216   :  { %163 = vmax.xlane.f32.xlu1 %v162_v20 }
 0x29f   :  { %v164_v21 = vpop.xlane.xlu1 %163 }
 0x2a0   :  { %vm165_vm3 = vcmp.ge.f32.partialorder %v162_v20, %v164_v21 }
 0x2a1   :  { %v166_v22 = vsel %vm165_vm3, -inf, %v162_v20 }
 0x2a2   :  { %167 = vmax.xlane.f32.xlu1 %v166_v22 }
 0x32b   :  { %v168_v23 = vpop.xlane.xlu1 %167 }
 0x32c   :  { %vm169_vm4 = vcmp.ge.f32.partialorder %v166_v22, %v168_v23 }
 0x32d   :  { %v170_v24 = vsel %vm169_vm4, -inf, %v166_v22 }
 0x32e   :  { %171 = vmax.xlane.f32.xlu0 %v170_v24 }
 0x3b7   :  { %v172_v25 = vpop.xlane.xlu0 %171 }
 0x3b8   :  { %vm173_vm5 = vcmp.ge.f32.partialorder %v170_v24, %v172_v25 }
 0x3b9   :  { %v174_v26 = vsel %vm173_vm5, -inf, %v170_v24 }
 0x3ba   :  { %175 = vmax.xlane.f32.xlu1 %v174_v26 }
 0x443   :  { %v176_v27 = vpop.xlane.xlu1 %175 }
 0x444   :  { %vm177_vm6 = vcmp.ge.f32.partialorder %v150_v13, %v176_v27 }
 0x445   :  { %v178_v28 = vsel %vm177_vm6, %v150_v13, 0.0 }
 0x446   :  { %179 = vst [vmem:[#allocation7] sm:$0xff] %v178_v28 }
 0x447   :  { %300 = shalt.err (!%p297_p0)
}
 0x448   :  { %189 = dma.vmem_to_hbm [thread:$0]  %s187_s24, 128, %s357_s3, [#allocation4]  }
 0x449   :  { %313 = dma.done.wait [#allocation4], 128  }
 0x44a   :  { %314 = vsyncadd [#allocation4], 4294967168 }
 0x44b   :  { %193 = vsyncpa [#allocation3], 1 }
 0x44c   :  { %194 = vsyncpa [#allocation6], 1 }
 0x44d   :  { %195 = vsyncpa [#allocation4], 1 }

// kernel: tpu_custom_call.1
= control target key start
LH: loop header
LB: loop body
LE: loop exit
PB: predicated region body
PF: predicated region fallthrough
CT: control target
= control target key end

     0   :  { %8 = vsyncpa [#allocation3], 0  ;;  %s354_s0 = inlined_call_operand.hbm [shape: f32[8,128], index: 0, kind: input, shape index: {}]   ;;  %s355_s1 = inlined_call_operand.hbm [shape: bf16[128,128], index: 1, kind: input, shape index: {}]   ;;  %s356_s2 = inlined_call_operand.vmem [shape: f32[1,128], index: 2, kind: input, shape index: {}]   ;;  %s357_s3 = inlined_call_operand.hbm [shape: f32[8,128], index: 3, kind: output, shape index: {}]  }
   0x1   :  { %9 = vsyncpa [#allocation6], 0 }
   0x2   :  { %10 = vsyncpa [#allocation4], 0  ;;  %s315_s12 = smov [#allocation2]   ;;  %s316_s14 = smov [#allocation5]  }
   0x3   :  { %s17_s13 = sshll.u32 %s315_s12, 4  ;;  %s26_s15 = sshll.u32 %s316_s14, 4  ;;  %s18_s13 = int_to_ptr.vmem [resolvable:$true] %s17_s13  ;;  %s27_s15 = int_to_ptr.vmem [resolvable:$true] %s26_s15 }
   0x4   :  { %s257_s16 = scalar_lea.vmem %s18_s13, 128  ;;  %p262_p1 = scmp.lt.s32.totalorder %s18_s13, %s18_s13 }
   0x5   :  { %p258_p0 = scmp.ne.s32.totalorder %s18_s13, %s257_s16  ;;  %p263_p2 = scmp.lt.s32.totalorder %s257_s16, %s257_s16 }
   0x7   :  { %p264_p3 = por %p263_p2, %p262_p1 }
   0x9   :  { %p265_p4 = pnand %p264_p3, %p258_p0 }
   0xb   :  { %268 = shalt.err (!%p265_p4)
}
   0xc   :  { %20 = dma.hbm_to_vmem [thread:$0]  %s354_s0, 128, %s18_s13, [#allocation3]  }
   0xd   :  { %s277_s19 = scalar_lea.vmem %s27_s15, 1024  ;;  %p282_p6 = scmp.lt.s32.totalorder %s27_s15, %s27_s15 }
   0xe   :  { %p278_p5 = scmp.ne.s32.totalorder %s27_s15, %s277_s19  ;;  %p283_p7 = scmp.lt.s32.totalorder %s277_s19, %s277_s19 }
  0x10   :  { %p284_p8 = por %p283_p7, %p282_p6 }
  0x12   :  { %p285_p9 = pnand %p284_p8, %p278_p5 }
  0x14   :  { %288 = shalt.err (!%p285_p9)
}
  0x15   :  { %s317_s20 = smov 64   ;;  %s318_s21 = smov 4  }
  0x16   :  { %32 = dma.hbm_to_vmem [thread:$0]  %s355_s1, 1024, %s27_s15, [#allocation6], %s317_s20, %s317_s20, %s318_s21  }
  0x17   :  { %309 = dma.done.wait [#allocation3], 128  }
  0x18   :  { %310 = vsyncadd [#allocation3], 4294967168 }
  0x19   :  { %311 = dma.done.wait [#allocation6], 1024  }
  0x1a   :  { %312 = vsyncadd [#allocation6], 4294966272  ;;  %v319_v0 = vmov 0.0   ;;  %vm320_vm0 = vmmov 0   ;;  %v241_v1 = vld [vmem:[#allocation5 + $0x38] sm:$0xff]   ;;  %v242_v2 = vld [vmem:[#allocation5 + $0x30] sm:$0xff]  }
  0x1b   :  { %214 = vmatprep.subr.bf16.mxu0 %v319_v0  ;;  %230 = vmatprep.mubr.msk.bf16.mxu0 %vm320_vm0, %v319_v0  ;;  %v243_v3 = vld [vmem:[#allocation5 + $0x28] sm:$0xff]   ;;  %v244_v4 = vld [vmem:[#allocation5 + $0x20] sm:$0xff]   ;;  %v245_v5 = vld [vmem:[#allocation5 + $0x18] sm:$0xff]  }
  0x1c   :  { %215 = vmatpush3.bf16.msra.mxu0 %v241_v1  ;;  %v246_v6 = vld [vmem:[#allocation5 + $0x10] sm:$0xff]   ;;  %v247_v7 = vld [vmem:[#allocation5 + $0x8] sm:$0xff]   ;;  %v248_v8 = vld [vmem:[#allocation5] sm:$0xff]  }
  0x1d   :  { %216 = vmatprep.subr.bf16.mxu0 %v319_v0  ;;  %v42_v9 = vld [vmem:[#allocation2] sm:$0xff] }
  0x1e   :  { %v43_v10 = vpack.c.bf16 %v42_v9, %v42_v9  ;;  %v196_v11 = vld [vmem:[%s356_s2] ss:$0 sm:$0xff]  ;;  %s321_s2 = smov [#allocation7]  }
  0x1f   :  { %s186_s24 = sshll.u32 %s321_s2, 4  ;;  %s187_s24 = int_to_ptr.vmem [resolvable:$true] %s186_s24 }
  0x20   :  { %217 = vmatpush3.bf16.msra.mxu0 %v242_v2  ;;  %s289_s25 = scalar_lea.vmem %s187_s24, 128  ;;  %p294_p11 = scmp.lt.s32.totalorder %s187_s24, %s187_s24 }
  0x21   :  { %218 = vmatprep.subr.bf16.mxu0 %v319_v0  ;;  %p290_p10 = scmp.ne.s32.totalorder %s187_s24, %s289_s25  ;;  %p295_p12 = scmp.lt.s32.totalorder %s289_s25, %s289_s25 }
  0x23   :  { %p296_p13 = por %p295_p12, %p294_p11 }
  0x24   :  { %219 = vmatpush3.bf16.msra.mxu0 %v243_v3 }
  0x25   :  { %220 = vmatprep.subr.bf16.mxu0 %v319_v0  ;;  %p297_p0 = pnand %p296_p13, %p290_p10 }
  0x28   :  { %221 = vmatpush3.bf16.msra.mxu0 %v244_v4 }
  0x29   :  { %222 = vmatprep.subr.bf16.mxu0 %v319_v0 }
  0x2c   :  { %223 = vmatpush3.bf16.msra.mxu0 %v245_v5 }
  0x2d   :  { %224 = vmatprep.subr.bf16.mxu0 %v319_v0 }
  0x30   :  { %225 = vmatpush3.bf16.msra.mxu0 %v246_v6 }
  0x31   :  { %226 = vmatprep.subr.bf16.mxu0 %v319_v0 }
  0x34   :  { %227 = vmatpush3.bf16.msra.mxu0 %v247_v7 }
  0x35   :  { %228 = vmatprep.subr.bf16.mxu0 %v319_v0 }
  0x38   :  { %229 = vmatpush3.bf16.msra.mxu0 %v248_v8 }
  0x3b   :  { %231 = vmatmul.mubr.bf16.vlgmr.msra.gmra.mxu0 %v43_v10 }
  0xfb   :  { %v149_v12 = vpop.f32.mrf.mxu0 }
  0xfc   :  { %v150_v13 = vadd.f32 %v196_v11, %v149_v12 }
  0xfd   :  { %v232_v14 = vpop.f32.mrf.mxu0 }
  0xfe   :  { %155 = vmax.xlane.f32.xlu0 %v150_v13 }
  0xff   :  { %v152_v15 = vpop.f32.mrf.mxu0 }
 0x101   :  { %v233_v16 = vpop.f32.mrf.mxu0 }
 0x187   :  { %v156_v17 = vpop.xlane.xlu0 %155 }
 0x188   :  { %vm157_vm1 = vcmp.ge.f32.partialorder %v150_v13, %v156_v17 }
 0x189   :  { %v158_v18 = vsel %vm157_vm1, -inf, %v150_v13 }
 0x18a   :  { %159 = vmax.xlane.f32.xlu0 %v158_v18 }
 0x213   :  { %v160_v19 = vpop.xlane.xlu0 %159 }
 0x214   :  { %vm161_vm2 = vcmp.ge.f32.partialorder %v158_v18, %v160_v19 }
 0x215   :  { %v162_v20 = vsel %vm161_vm2, -inf, %v158_v18 }
 0x216   :  { %163 = vmax.xlane.f32.xlu1 %v162_v20 }
 0x29f   :  { %v164_v21 = vpop.xlane.xlu1 %163 }
 0x2a0   :  { %vm165_vm3 = vcmp.ge.f32.partialorder %v162_v20, %v164_v21 }
 0x2a1   :  { %v166_v22 = vsel %vm165_vm3, -inf, %v162_v20 }
 0x2a2   :  { %167 = vmax.xlane.f32.xlu1 %v166_v22 }
 0x32b   :  { %v168_v23 = vpop.xlane.xlu1 %167 }
 0x32c   :  { %vm169_vm4 = vcmp.ge.f32.partialorder %v166_v22, %v168_v23 }
 0x32d   :  { %v170_v24 = vsel %vm169_vm4, -inf, %v166_v22 }
 0x32e   :  { %171 = vmax.xlane.f32.xlu0 %v170_v24 }
 0x3b7   :  { %v172_v25 = vpop.xlane.xlu0 %171 }
 0x3b8   :  { %vm173_vm5 = vcmp.ge.f32.partialorder %v170_v24, %v172_v25 }
 0x3b9   :  { %v174_v26 = vsel %vm173_vm5, -inf, %v170_v24 }
 0x3ba   :  { %175 = vmax.xlane.f32.xlu1 %v174_v26 }
 0x443   :  { %v176_v27 = vpop.xlane.xlu1 %175 }
 0x444   :  { %vm177_vm6 = vcmp.ge.f32.partialorder %v150_v13, %v176_v27 }
 0x445   :  { %v178_v28 = vsel %vm177_vm6, %v150_v13, 0.0 }
 0x446   :  { %179 = vst [vmem:[#allocation7] sm:$0xff] %v178_v28 }
 0x447   :  { %300 = shalt.err (!%p297_p0)
}
 0x448   :  { %189 = dma.vmem_to_hbm [thread:$0]  %s187_s24, 128, %s357_s3, [#allocation4]  }
 0x449   :  { %313 = dma.done.wait [#allocation4], 128  }
 0x44a   :  { %314 = vsyncadd [#allocation4], 4294967168 }
 0x44b   :  { %193 = vsyncpa [#allocation3], 1 }
 0x44c   :  { %194 = vsyncpa [#allocation6], 1 }
 0x44d   :  { %195 = vsyncpa [#allocation4], 1 }

</bundles_post_ra>
